<compile_context>
chip_gen: v7x
topology: tpu7x:2x2x1
jax: 0.10.0
libtpu: 0.0.40
codegen_flags: <defaults>
</compile_context>

<pallas_src>
import functools

import jax
import jax.numpy as jnp
from jax.experimental import pallas as pl
from jax.experimental.pallas import tpu as pltpu


def _moving_max_kernel(x_ref, o_ref, *, kernel_size, tl):
    # x_ref: (Lblk, C) input tile   (Lblk >= tl * kernel_size)
    # o_ref: (tl,  C)  output tile
    acc = x_ref[pl.ds(0, tl, stride=kernel_size), :]
    for j in range(1, kernel_size):
        acc = jnp.maximum(acc, x_ref[pl.ds(j, tl, stride=kernel_size), :])
    o_ref[...] = acc


def _round_up(v, m):
    return (v + m - 1) // m * m


def moving_max_initdata(x, kernel_size, *, target_block_bytes=2 * 1024 * 1024):
    """x: (B, L, C) array. Returns (B, L // kernel_size, C) windowed max."""
    k = int(kernel_size)          # requires a concrete (non-traced) kernel size
    B, L, C = x.shape
    l_out = L // k                # MaxPool1d(k, stride=k, padding=0)
    if l_out == 0:
        return jnp.zeros((B, 0, C), dtype=x.dtype)

    itemsize = jnp.dtype(x.dtype).itemsize

    # --- choose the L tile --------------------------------------------------
    # Target ~`target_block_bytes` per input block: big enough to sit near the
    # HBM roofline, small enough to double-buffer inside every generation's
    # scoped-VMEM default.
    rows_target = max(8 * k, target_block_bytes // max(1, C * itemsize))
    tl_target = max(8, (rows_target // k) // 8 * 8)   # output rows, multiple of 8
    tl = min(tl_target, l_out)

    if tl < l_out:
        # Multiple L tiles: tl is a multiple of 8, so the input block
        # (tl * k rows) is sublane-aligned and lines up exactly with windows.
        l_blk = tl * k
    else:
        # Single L tile: only l_out * k rows are needed; round the block up to
        # a sublane multiple (capped at L) to satisfy the (8, 128) rule.
        l_blk = min(L, _round_up(l_out * k, 8))

    n_l_tiles = pl.cdiv(l_out, tl)

    kernel = functools.partial(_moving_max_kernel, kernel_size=k, tl=tl)

    cost = pl.CostEstimate(
        flops=B * l_out * C * max(k - 1, 1),
        transcendentals=0,
        bytes_accessed=(B * l_out * k * C + B * l_out * C) * itemsize,
    )

    return pl.pallas_call(
        kernel,
        out_shape=jax.ShapeDtypeStruct((B, l_out, C), x.dtype),
        grid=(B, n_l_tiles),
        in_specs=[
            pl.BlockSpec((pl.Squeezed(), l_blk, C), lambda b, t: (b, t, 0)),
        ],
        out_specs=pl.BlockSpec((pl.Squeezed(), tl, C), lambda b, t: (b, t, 0)),
        compiler_params=pltpu.CompilerParams(
            dimension_semantics=("parallel", "parallel"),
        ),
        cost_estimate=cost,
    )(x)


def _reference(x, kernel_size):
    """Pure-JAX reference of the PyTorch forward pass."""
    B, L, C = x.shape
    k = int(kernel_size)
    l_out = L // k
    xr = x[:, : l_out * k, :].reshape(B, l_out, k, C)
    return jnp.max(xr, axis=2)


if __name__ == "__main__":
    # The module's __init__ takes kernel_size as a tensor and calls .tolist();
    # we mirror that with a concrete jnp scalar.
    kernel_size = jnp.array(4)   # analogous to torch.tensor(4)

    key = jax.random.PRNGKey(0)

    # Primary small test (matches the module's expected (B, L, C) input).
    B, L, C = 2, 16, 8
    x = jax.random.normal(key, (B, L, C), dtype=jnp.float32)
    out = jax.block_until_ready(moving_max_initdata(x, kernel_size))
    ref = _reference(x, kernel_size)
    assert out.shape == (B, L // int(kernel_size), C), out.shape
    assert jnp.allclose(out, ref), "mismatch vs reference (single-tile path)"

    # Exercise the tiled (multi L-tile) path with a tiny block budget.
    key2 = jax.random.PRNGKey(0)
    x2 = jax.random.normal(key2, (2, 128, 8), dtype=jnp.float32)
    out2 = jax.block_until_ready(
        moving_max_initdata(x2, kernel_size, target_block_bytes=1024)
    )
    assert jnp.allclose(out2, _reference(x2, kernel_size)), \
        "mismatch vs reference (tiled path)"

    # Ragged L % k tail (tail rows must be ignored, never read).
    x3 = jax.random.normal(key2, (2, 130, 8), dtype=jnp.float32)
    out3 = jax.block_until_ready(
        moving_max_initdata(x3, kernel_size, target_block_bytes=1024)
    )
    assert jnp.allclose(out3, _reference(x3, kernel_size)), \
        "mismatch vs reference (ragged tail)"

    print("KERNEL_OK")
</pallas_src>

<mosaic_0001>
module attributes {stable_mosaic.version = 11 : i64} {
  func.func @_moving_max_kernel(%arg0: i32, %arg1: i32, %arg2: memref<1x16x8xf32, #tpu.memory_space<vmem>>, %arg3: memref<1x4x8xf32, #tpu.memory_space<vmem>>) attributes {dimension_semantics = [#tpu.dimension_semantics<parallel>, #tpu.dimension_semantics<parallel>], iteration_bounds = array<i64: 2, 1>, scalar_prefetch = 0 : i64, scratch_operands = 0 : i64, tpu.core_type = #tpu.core_type<tc>, window_params = [{transform_indices = @transform_0, window_bounds = array<i64: 1, 16, 8>}, {transform_indices = @transform_1, window_bounds = array<i64: 1, 4, 8>}]} {
    %c0 = arith.constant 0 : index
    %c0_0 = arith.constant 0 : index
    %c0_1 = arith.constant 0 : index
    %0 = tpu.strided_load %arg2[%c0, %c0_0, %c0_1] {strides = array<i32: 1, 4, 1>} : memref<1x16x8xf32, #tpu.memory_space<vmem>>, vector<1x4x8xf32>
    %1 = vector.shape_cast %0 : vector<1x4x8xf32> to vector<4x8xf32>
    %c0_2 = arith.constant 0 : index
    %c1 = arith.constant 1 : index
    %c0_3 = arith.constant 0 : index
    %2 = tpu.strided_load %arg2[%c0_2, %c1, %c0_3] {strides = array<i32: 1, 4, 1>} : memref<1x16x8xf32, #tpu.memory_space<vmem>>, vector<1x4x8xf32>
    %3 = vector.shape_cast %2 : vector<1x4x8xf32> to vector<4x8xf32>
    %4 = arith.maximumf %1, %3 : vector<4x8xf32>
    %c0_4 = arith.constant 0 : index
    %c2 = arith.constant 2 : index
    %c0_5 = arith.constant 0 : index
    %5 = tpu.strided_load %arg2[%c0_4, %c2, %c0_5] {strides = array<i32: 1, 4, 1>} : memref<1x16x8xf32, #tpu.memory_space<vmem>>, vector<1x4x8xf32>
    %6 = vector.shape_cast %5 : vector<1x4x8xf32> to vector<4x8xf32>
    %7 = arith.maximumf %4, %6 : vector<4x8xf32>
    %c0_6 = arith.constant 0 : index
    %c3 = arith.constant 3 : index
    %c0_7 = arith.constant 0 : index
    %8 = tpu.strided_load %arg2[%c0_6, %c3, %c0_7] {strides = array<i32: 1, 4, 1>} : memref<1x16x8xf32, #tpu.memory_space<vmem>>, vector<1x4x8xf32>
    %9 = vector.shape_cast %8 : vector<1x4x8xf32> to vector<4x8xf32>
    %10 = arith.maximumf %7, %9 : vector<4x8xf32>
    %c0_8 = arith.constant 0 : index
    %c0_9 = arith.constant 0 : index
    %c0_10 = arith.constant 0 : index
    %11 = vector.load %arg3[%c0_8, %c0_9, %c0_10] : memref<1x4x8xf32, #tpu.memory_space<vmem>>, vector<1x4x8xf32>
    %12 = vector.shape_cast %11 : vector<1x4x8xf32> to vector<4x8xf32>
    %13 = vector.shape_cast %10 : vector<4x8xf32> to vector<1x4x8xf32>
    tpu.vector_store %arg3[%c0_8, %c0_9, %c0_10], %13 {strides = array<i32>} : memref<1x4x8xf32, #tpu.memory_space<vmem>>, vector<1x4x8xf32>,
    return
  }
  func.func @transform_0(%arg0: i32, %arg1: i32) -> (i32, i32, i32) {
    %c0_i32 = arith.constant 0 : i32
    %c0_i32_0 = arith.constant 0 : i32
    return %arg0, %arg1, %c0_i32 : i32, i32, i32
  }
  func.func @transform_1(%arg0: i32, %arg1: i32) -> (i32, i32, i32) {
    %c0_i32 = arith.constant 0 : i32
    %c0_i32_0 = arith.constant 0 : i32
    return %arg0, %arg1, %c0_i32 : i32, i32, i32
  }
}

</mosaic_0001>

<bundles_post_ra>
// kernel: tpu_custom_call.1
= control target key start
LH: loop header
LB: loop body
LE: loop exit
PB: predicated region body
PF: predicated region fallthrough
CT: control target
= control target key end

     0   :  { %6 = vsyncpa [#allocation3], 0  ;;  %s520_s0 = inlined_call_operand.vmem [shape: f32[2,16,8], index: 0, kind: input, shape index: {}]   ;;  %s521_s1 = inlined_call_operand.hbm [shape: f32[2,4,8], index: 1, kind: output, shape index: {}]  }
   0x1   :  { %8 = vsyncpa [#allocation3 + $0x1], 0  ;;  %s408_s6 = smov 0   ;;  %s410_s7 = smov 0  }
   0x2   :  { %s412_s8 = smov 0   ;;  %s414_s9 = smov 0  }
   0x3   :  { %s416_s10 = smov 0   ;;  %s418_s11 = smov 0  }
   0x4 LB: > { %s246_s12 = sadd.s32 4294967295, %s395_s11   ;;  %s247_s13 = sadd.s32 4294967294, %s395_s11   ;;  %s395_s11 = sphi %s418_s11, %s14_s11   ;;  %s391_s10 = sphi %s416_s10, %s528_s10   ;;  %s387_s9 = sphi %s414_s9, %s527_s9   ;;  %s383_s8 = sphi %s412_s8, %s526_s8   ;;  %s379_s7 = sphi %s410_s7, %s525_s7   ;;  %s375_s6 = sphi %s408_s6, %s524_s6  }
   0x5   : > { %s26_s14 = sadd.s32 1, %s391_s10  ;;  %s63_s15 = sadd.s32 1, %s383_s8 }
   0x6   : > { %p28_p0 = scmp.ge.s32.totalorder %s26_s14, 2  ;;  %p73_p1 = scmp.ne.s32.totalorder %s383_s8, %s379_s7 }
   0x7   : > { %p74_p2 = scmp.eq.s32.totalorder %s246_s12, 1  ;;  %p79_p3 = scmp.ne.s32.totalorder %s379_s7, %s375_s6 }
   0x8   : > { %s530_s14 = smov (%p28_p0, %s26_s14), 0  ;;  %p80_p5 = scmp.eq.s32.totalorder %s247_s13, 1 }
   0x9   : > { %p448_p4 = por %p74_p2, %p73_p1  ;;  %s58_s17 = ssub.s32 %s391_s10, %s530_s14 }
   0xa   : > { %p250_p6 = scmp.ge.s32.totalorder %s395_s11, 1  ;;  %p61_p7 = scmp.eq.s32.totalorder %s58_s17, 0 }
   0xb   : > { %p455_p8 = por %p80_p5, %p79_p3  ;;  %p111_p9 = scmp.lt.s32.totalorder %s395_s11, 3 }
   0xc   : > { %s461_s19 = scalar_select %p61_p7, %s383_s8, %s63_s15  }
   0xd   : > { %p112_p10 = pnand %p250_p6, %p111_p9 }
   0xe   : > { %s132_s20 = sand.u32 (!%p112_p10), 1, %s379_s7   ;;  %p136_p11 = scmp.lt.s32.totalorder (!%p112_p10), %s387_s9, 1  ;;  %vm155_vm0 = vcmask (!%p112_p10), 60416  }
   0xf   : > { %115 = sbr.rel (%p112_p10) target bundleno = 47 (0x2f), region = 24  ;;  %s251_s21 = sshll.u32 (!%p112_p10), %s132_s20, 2 }
  0x10   : > { %s134_s27 = scalar_lea.vmem (!%p112_p10), [#allocation2], %s251_s21  ;;  %s258_s29 = sshll.u32 (!%p112_p10), %s387_s9, 6 }
  0x11   : > { %s172_s28 = sshll.u32 (!%p112_p10), %s134_s27, 4  ;;  %s475_s3 = scalar_lea.hbm (!%p112_p10), %s521_s1, %s258_s29  ;;  %s470_s28 = int_to_ptr.vmem [resolvable:$true] %s172_s28 }
  0x12   : > { %s158_s4 = scalar_lea.sflag (!%p112_p10), [#allocation3], %s132_s20  ;;  %s317_s5 = scalar_lea.vmem (!%p112_p10), %s470_s28, 64 }
  0x13   : > { %p318_p12 = scmp.ne.s32.totalorder (!%p112_p10), %s470_s28, %s317_s5 }
  0x15   : > { %p319_p13 = pnand (!%p112_p10), %p318_p12, %p448_p4 }
  0x16   : > { %s137_s22 = scalar_select %p136_p11, %s387_s9, 1 }
  0x17   : > { %p320_p0 = pneg %p319_p13  ;;  %s397_s9 = smov [#allocation2]  }
  0x18   : > { %s261_s23 = sshll.u32 %s137_s22, 4  ;;  %s321_s12 = sshll.u32 %s397_s9, 4  ;;  %s322_s12 = int_to_ptr.vmem [resolvable:$false] %s321_s12 }
  0x19   : > { %s143_s26 = scalar_lea.vmem %s520_s0, %s261_s23  ;;  %s323_s13 = scalar_lea.vmem %s322_s12, 128 }
  0x1a   : > { %v145_v0 = vld [vmem:[%s143_s26] ss:$4 sm:$0xf]  ;;  %v254_v1 = vld [vmem:[%s143_s26 + $0x1] ss:$4 sm:$0xf]  ;;  %p324_p1 = scmp.lt.s32.totalorder %s470_s28, %s322_s12  ;;  %p325_p2 = scmp.lt.s32.totalorder %s323_s13, %s317_s5 }
  0x1b   : > { %v148_v2 = vmax.f32 %v145_v0, %v254_v1  ;;  %v255_v3 = vld [vmem:[%s143_s26 + $0x2] ss:$4 sm:$0xf]  ;;  %v256_v4 = vld [vmem:[%s143_s26 + $0x3] ss:$4 sm:$0xf] }
  0x1c   : > { %p326_p3 = por %p325_p2, %p324_p1 }
  0x1d   : > { %v151_v5 = vmax.f32 %v148_v2, %v255_v3 }
  0x1e   : > { %p327_p5 = pnand %p326_p3, %p320_p0 }
  0x1f   : > { %v154_v6 = vmax.f32 %v151_v5, %v256_v4 }
  0x21   : > { %156 = vst.msk [vmem:[%s134_s27] sm:$0xf] %vm155_vm0, %v154_v6 }
  0x22   : > { %330 = shalt.err (!%p327_p5)
}
  0x23   : > { %s331_s15 = scalar_lea.hbm %s475_s3, 64  ;;  %s335_s21 = scalar_lea.hbm %s521_s1, 128 }
  0x24   : > { %p332_p6 = scmp.ne.s32.totalorder %s475_s3, %s331_s15  ;;  %p336_p10 = scmp.lt.u32.totalorder %s475_s3, %s521_s1 }
  0x25   : > { %p337_p11 = scmp.lt.u32.totalorder %s335_s21, %s331_s15  ;;  %p339_p13 = scmp.lt.u32.totalorder %s331_s15, %s475_s3 }
  0x26   : > { %p333_p7 = pnand %p332_p6, %p448_p4 }
  0x27   : > { %p338_p12 = por %p337_p11, %p336_p10 }
  0x28   : > { %p334_p9 = pneg %p333_p7 }
  0x29   : > { %p340_p0 = por %p339_p13, %p338_p12 }
  0x2b   : > { %p341_p1 = pnand %p340_p0, %p334_p9 }
  0x2d   : > { %344 = shalt.err (!%p341_p1)
}
  0x2e   : > { %262 = dma.vmem_to_hbm [thread:$0]  (%p448_p4), %s470_s28, 64, %s475_s3, %s158_s4  }
  0x2f PF: > { %p268_p2 = scmp.ge.s32.totalorder %s395_s11, 2  ;;  %s184_s24 = sand.u32 1, %s375_s6  }
  0x30   : > { %s185_s25 = scalar_lea.sflag [#allocation3], %s184_s24 }
  0x31   : > { %p265_p3 = pnand %p268_p2, %p455_p8 }
  0x33   : > { %370 = dma.done.wait (!%p265_p3), %s185_s25, 64  }
  0x34   : > { %372 = vsyncadd (!%p265_p3), %s185_s25, 4294967232  ;;  %s14_s11 = sadd.s32 1, %s395_s11   ;;  %s524_s6 = smov %s379_s7 }
  0x35   : > { %p11_p5 = scmp.ge.s32.totalorder %s14_s11, 4   ;;  %s525_s7 = smov %s383_s8 }
  0x36   : > { %s526_s8 = smov %s461_s19  ;;  %s527_s9 = smov %s391_s10 }
  0x37   : > { %s528_s10 = smov %s530_s14  ;;  %13 = sbr.rel (!%p11_p5) target bundleno = 4 (0x4), region = 62 }
  0x3e   :  { %190 = vsyncpa [#allocation3], 1 }
  0x3f   :  { %192 = vsyncpa [#allocation3 + $0x1], 1 }

</bundles_post_ra>
